<compile_context>
chip_gen: v7x
topology: tpu7x:2x2x1
jax: 0.10.0
libtpu: 0.0.40
codegen_flags: <defaults>
</compile_context>

<pallas_src>
import functools

import jax
import jax.numpy as jnp
from jax.experimental import pallas as pl
from jax.experimental.pallas import tpu as pltpu


def value_net_kernel(x_ref, w1_ref, b1_ref, w2_ref, b2_ref, w3_ref, b3_ref, o_ref):
    # Layer 1: Linear(state_dim, hidden) + ReLU  (bf16 MXU inputs, f32 accumulate)
    h1 = jnp.dot(x_ref[...], w1_ref[...],
                 preferred_element_type=jnp.float32) + b1_ref[...]
    h1 = jnp.maximum(h1, 0.0)                                    # (TB, H) f32

    # Layer 2: Linear(hidden, hidden) + ReLU
    h2 = jnp.dot(h1.astype(jnp.bfloat16), w2_ref[...],
                 preferred_element_type=jnp.float32) + b2_ref[...]
    h2 = jnp.maximum(h2, 0.0)                                    # (TB, H) f32

    # Head: Linear(hidden, 1) + ReLU, computed as w3 (1,H) contracted with
    # h2 (TB,H) over H -> (1, TB).  Result is naturally lane-major, so the
    # epilogue and the output store are lane-dense (no masked per-row stores).
    head = jax.lax.dot_general(
        w3_ref[...], h2.astype(jnp.bfloat16),
        dimension_numbers=(((1,), (1,)), ((), ())),
        preferred_element_type=jnp.float32)                      # (1, TB) f32
    head = jnp.maximum(head + b3_ref[0, 0], 0.0)
    o_ref[...] = head.reshape(o_ref.shape)                       # (1, 1, TB)


def _round_up(n, m):
    return ((n + m - 1) // m) * m


@functools.partial(jax.jit, static_argnames=("tb",))
def value_net_forward(x, params, *, tb=4096):
    B, S = x.shape
    H = params["w1"].shape[1]

    # Hoisted bf16 casts (run once per call, NOT once per grid step).
    w1 = params["w1"].astype(jnp.bfloat16)
    w2 = params["w2"].astype(jnp.bfloat16)
    w3 = params["w3"].astype(jnp.bfloat16)
    b1, b2, b3 = params["b1"], params["b2"], params["b3"]
    if x.dtype != jnp.bfloat16:
        # Upstream producers should emit bf16 so this cast fuses away entirely.
        x = x.astype(jnp.bfloat16)

    # Batch tile: as large as tb, but capped so the grid keeps >=2 steps
    # (required for "parallel" to use both TensorCores on v7x).  Multiple of 8
    # (sublane granularity).  No explicit padding of x: the last partial block
    # is handled by Pallas and its garbage rows are sliced off below.
    tile = min(tb, max(8, _round_up((B + 1) // 2, 8)))
    grid = (pl.cdiv(B, tile),)

    out = pl.pallas_call(
        value_net_kernel,
        out_shape=jax.ShapeDtypeStruct((grid[0], 1, tile), jnp.float32),
        grid=grid,
        in_specs=[
            pl.BlockSpec((tile, S), lambda i: (i, 0)),           # x: tiled on batch (bf16)
            pl.BlockSpec((S, H), lambda i: (0, 0)),              # w1: resident (bf16)
            pl.BlockSpec((1, H), lambda i: (0, 0)),              # b1: resident (f32)
            pl.BlockSpec((H, H), lambda i: (0, 0)),              # w2: resident (bf16)
            pl.BlockSpec((1, H), lambda i: (0, 0)),              # b2: resident (f32)
            pl.BlockSpec((1, H), lambda i: (0, 0)),              # w3 row: resident (bf16)
            pl.BlockSpec(memory_space=pltpu.MemorySpace.SMEM),   # b3: SMEM scalar
        ],
        out_specs=pl.BlockSpec((1, 1, tile), lambda i: (i, 0, 0)),  # lane-dense rows
        compiler_params=pltpu.CompilerParams(
            dimension_semantics=("parallel",),     # shard batch across TCs (v7x)
            vmem_limit_bytes=32 * 1024 * 1024,     # explicit, safe on v5e/v6e/v7x
        ),
    )(x, w1, b1, w2, b2, w3, b3)

    # (grid, 1, tile) lane-dense slab -> (B, 1) column; drops partial-block rows.
    return out.reshape(-1, 1)[:B]


def init_params(key, state_dim, hidden_dim):
    """Deterministic synthetic init (PyTorch-style uniform fan-in scaling)."""
    ks = jax.random.split(key, 6)

    def unif(k, shape, fan_in):
        bound = 1.0 / jnp.sqrt(float(fan_in))
        return jax.random.uniform(k, shape, jnp.float32, -bound, bound)

    return {
        # w1/w2 stored as (in, out): transpose of PyTorch's (out, in).
        "w1": unif(ks[0], (state_dim, hidden_dim), state_dim),
        "b1": unif(ks[1], (1, hidden_dim), state_dim),
        "w2": unif(ks[2], (hidden_dim, hidden_dim), hidden_dim),
        "b2": unif(ks[3], (1, hidden_dim), hidden_dim),
        # Head weight as a (1, hidden) row == PyTorch fc1.weight layout.
        "w3": unif(ks[4], (1, hidden_dim), hidden_dim),
        "b3": unif(ks[5], (1, 1), hidden_dim),
    }


def value_net_reference_f32(x, p):
    """Pure f32 reference (original PyTorch semantics)."""
    h1 = jnp.maximum(x @ p["w1"] + p["b1"], 0.0)
    h2 = jnp.maximum(h1 @ p["w2"] + p["b2"], 0.0)
    out = h2 @ p["w3"].T + p["b3"]
    return jnp.maximum(out, 0.0)


def value_net_reference_bf16(x, p):
    """Reference with the same bf16-input / f32-accumulate matmuls as the kernel."""
    h1 = jnp.dot(x.astype(jnp.bfloat16), p["w1"].astype(jnp.bfloat16),
                 preferred_element_type=jnp.float32) + p["b1"]
    h1 = jnp.maximum(h1, 0.0)
    h2 = jnp.dot(h1.astype(jnp.bfloat16), p["w2"].astype(jnp.bfloat16),
                 preferred_element_type=jnp.float32) + p["b2"]
    h2 = jnp.maximum(h2, 0.0)
    out = jnp.dot(h2.astype(jnp.bfloat16), p["w3"].astype(jnp.bfloat16).T,
                  preferred_element_type=jnp.float32) + p["b3"]
    return jnp.maximum(out, 0.0)


if __name__ == "__main__":
    state_dim, hidden_dim = 4, 32
    key = jax.random.PRNGKey(0)
    k_x, k_p = jax.random.split(key)
    params = init_params(k_p, state_dim, hidden_dim)

    # Small shape from the module spec (single grid step).
    batch = 8
    x = jax.random.normal(k_x, (batch, state_dim), jnp.float32)
    out = jax.block_until_ready(value_net_forward(x, params))
    assert out.shape == (batch, 1), out.shape
    assert jnp.allclose(out, value_net_reference_bf16(x, params), atol=1e-3, rtol=1e-3)
    assert jnp.allclose(out, value_net_reference_f32(x, params), atol=5e-2, rtol=5e-2)

    # Second check exercising grid>1 ("parallel" path) and a partial last block.
    batch2 = 300
    x2 = jax.random.normal(jax.random.PRNGKey(1), (batch2, state_dim), jnp.float32)
    out2 = jax.block_until_ready(value_net_forward(x2, params))
    assert out2.shape == (batch2, 1), out2.shape
    assert jnp.allclose(out2, value_net_reference_bf16(x2, params), atol=1e-3, rtol=1e-3)
    assert jnp.allclose(out2, value_net_reference_f32(x2, params), atol=5e-2, rtol=5e-2)
    assert bool(jnp.all(jnp.isfinite(out2)))

    print("KERNEL_OK")
</pallas_src>

<mosaic_0001>
module attributes {stable_mosaic.version = 11 : i64} {
  func.func @value_net_kernel(%arg0: i32, %arg1: memref<8x4xbf16, #tpu.memory_space<vmem>>, %arg2: memref<4x32xbf16, #tpu.memory_space<vmem>>, %arg3: memref<1x32xf32, #tpu.memory_space<vmem>>, %arg4: memref<32x32xbf16, #tpu.memory_space<vmem>>, %arg5: memref<1x32xf32, #tpu.memory_space<vmem>>, %arg6: memref<1x32xbf16, #tpu.memory_space<vmem>>, %arg7: memref<1x1xf32, #tpu.memory_space<smem>>, %arg8: memref<1x1x8xf32, #tpu.memory_space<vmem>>) attributes {dimension_semantics = [#tpu.dimension_semantics<parallel>], iteration_bounds = array<i64: 1>, scalar_prefetch = 0 : i64, scratch_operands = 0 : i64, tpu.core_type = #tpu.core_type<tc>, window_params = [{transform_indices = @transform_0, window_bounds = array<i64: 8, 4>}, {pipeline_mode = #tpu.pipeline_mode<synchronous>, transform_indices = @transform_1, window_bounds = array<i64: 4, 32>}, {pipeline_mode = #tpu.pipeline_mode<synchronous>, transform_indices = @transform_2, window_bounds = array<i64: 1, 32>}, {pipeline_mode = #tpu.pipeline_mode<synchronous>, transform_indices = @transform_3, window_bounds = array<i64: 32, 32>}, {pipeline_mode = #tpu.pipeline_mode<synchronous>, transform_indices = @transform_4, window_bounds = array<i64: 1, 32>}, {pipeline_mode = #tpu.pipeline_mode<synchronous>, transform_indices = @transform_5, window_bounds = array<i64: 1, 32>}, {transform_indices = @transform_6, window_bounds = array<i64: 1, 1>}, {transform_indices = @transform_7, window_bounds = array<i64: 1, 1, 8>}]} {
    %c0 = arith.constant 0 : index
    %c0_0 = arith.constant 0 : index
    %0 = vector.load %arg1[%c0, %c0_0] : memref<8x4xbf16, #tpu.memory_space<vmem>>, vector<8x4xbf16>
    %c0_1 = arith.constant 0 : index
    %c0_2 = arith.constant 0 : index
    %1 = vector.load %arg2[%c0_1, %c0_2] : memref<4x32xbf16, #tpu.memory_space<vmem>>, vector<4x32xbf16>
    %cst = arith.constant dense<0.000000e+00> : vector<8x32xf32>
    %2 = tpu.matmul %0, %1, %cst {dimension_numbers = #tpu.dot_dimension_numbers<[1], [0], [0], [1], [0, 0, 1, 1], [], []>} : vector<8x4xbf16>, vector<4x32xbf16>, vector<8x32xf32> -> vector<8x32xf32>
    %c0_3 = arith.constant 0 : index
    %c0_4 = arith.constant 0 : index
    %3 = vector.load %arg3[%c0_3, %c0_4] : memref<1x32xf32, #tpu.memory_space<vmem>>, vector<1x32xf32>
    %4 = vector.broadcast %3 : vector<1x32xf32> to vector<8x32xf32>
    %5 = arith.addf %2, %4 : vector<8x32xf32>
    %cst_5 = arith.constant 0.000000e+00 : f32
    %6 = vector.broadcast %cst_5 : f32 to vector<8x32xf32>
    %7 = arith.maximumf %5, %6 : vector<8x32xf32>
    %8 = arith.truncf %7 : vector<8x32xf32> to vector<8x32xbf16>
    %c0_6 = arith.constant 0 : index
    %c0_7 = arith.constant 0 : index
    %9 = vector.load %arg4[%c0_6, %c0_7] : memref<32x32xbf16, #tpu.memory_space<vmem>>, vector<32x32xbf16>
    %cst_8 = arith.constant dense<0.000000e+00> : vector<8x32xf32>
    %10 = tpu.matmul %8, %9, %cst_8 {dimension_numbers = #tpu.dot_dimension_numbers<[1], [0], [0], [1], [0, 0, 1, 1], [], []>} : vector<8x32xbf16>, vector<32x32xbf16>, vector<8x32xf32> -> vector<8x32xf32>
    %c0_9 = arith.constant 0 : index
    %c0_10 = arith.constant 0 : index
    %11 = vector.load %arg5[%c0_9, %c0_10] : memref<1x32xf32, #tpu.memory_space<vmem>>, vector<1x32xf32>
    %12 = vector.broadcast %11 : vector<1x32xf32> to vector<8x32xf32>
    %13 = arith.addf %10, %12 : vector<8x32xf32>
    %cst_11 = arith.constant 0.000000e+00 : f32
    %14 = vector.broadcast %cst_11 : f32 to vector<8x32xf32>
    %15 = arith.maximumf %13, %14 : vector<8x32xf32>
    %c0_12 = arith.constant 0 : index
    %c0_13 = arith.constant 0 : index
    %16 = vector.load %arg6[%c0_12, %c0_13] : memref<1x32xbf16, #tpu.memory_space<vmem>>, vector<1x32xbf16>
    %17 = arith.truncf %15 : vector<8x32xf32> to vector<8x32xbf16>
    %cst_14 = arith.constant dense<0.000000e+00> : vector<1x8xf32>
    %18 = tpu.matmul %16, %17, %cst_14 {dimension_numbers = #tpu.dot_dimension_numbers<[1], [1], [0], [0], [0, 0, 1, 0], [], []>} : vector<1x32xbf16>, vector<8x32xbf16>, vector<1x8xf32> -> vector<1x8xf32>
    %c0_15 = arith.constant 0 : index
    %c0_16 = arith.constant 0 : index
    %19 = memref.load %arg7[%c0_15, %c0_16] : memref<1x1xf32, #tpu.memory_space<smem>>
    %20 = vector.broadcast %19 : f32 to vector<1x8xf32>
    %21 = arith.addf %18, %20 : vector<1x8xf32>
    %cst_17 = arith.constant 0.000000e+00 : f32
    %22 = vector.broadcast %cst_17 : f32 to vector<1x8xf32>
    %23 = arith.maximumf %21, %22 : vector<1x8xf32>
    %24 = vector.shape_cast %23 : vector<1x8xf32> to vector<1x1x8xf32>
    %c0_18 = arith.constant 0 : index
    %c0_19 = arith.constant 0 : index
    %c0_20 = arith.constant 0 : index
    %25 = vector.load %arg8[%c0_18, %c0_19, %c0_20] : memref<1x1x8xf32, #tpu.memory_space<vmem>>, vector<1x1x8xf32>
    tpu.vector_store %arg8[%c0_18, %c0_19, %c0_20], %24 {strides = array<i32>} : memref<1x1x8xf32, #tpu.memory_space<vmem>>, vector<1x1x8xf32>,
    return
  }
  func.func @transform_0(%arg0: i32) -> (i32, i32) {
    %c0_i32 = arith.constant 0 : i32
    %c0_i32_0 = arith.constant 0 : i32
    return %arg0, %c0_i32 : i32, i32
  }
  func.func @transform_1(%arg0: i32) -> (i32, i32) {
    %c0_i32 = arith.constant 0 : i32
    %c0_i32_0 = arith.constant 0 : i32
    %c0_i32_1 = arith.constant 0 : i32
    return %c0_i32, %c0_i32_0 : i32, i32
  }
  func.func @transform_2(%arg0: i32) -> (i32, i32) {
    %c0_i32 = arith.constant 0 : i32
    %c0_i32_0 = arith.constant 0 : i32
    %c0_i32_1 = arith.constant 0 : i32
    return %c0_i32, %c0_i32_0 : i32, i32
  }
  func.func @transform_3(%arg0: i32) -> (i32, i32) {
    %c0_i32 = arith.constant 0 : i32
    %c0_i32_0 = arith.constant 0 : i32
    %c0_i32_1 = arith.constant 0 : i32
    return %c0_i32, %c0_i32_0 : i32, i32
  }
  func.func @transform_4(%arg0: i32) -> (i32, i32) {
    %c0_i32 = arith.constant 0 : i32
    %c0_i32_0 = arith.constant 0 : i32
    %c0_i32_1 = arith.constant 0 : i32
    return %c0_i32, %c0_i32_0 : i32, i32
  }
  func.func @transform_5(%arg0: i32) -> (i32, i32) {
    %c0_i32 = arith.constant 0 : i32
    %c0_i32_0 = arith.constant 0 : i32
    %c0_i32_1 = arith.constant 0 : i32
    return %c0_i32, %c0_i32_0 : i32, i32
  }
  func.func @transform_6(%arg0: i32) -> (i32, i32) {
    %c0_i32 = arith.constant 0 : i32
    %c0_i32_0 = arith.constant 0 : i32
    %c0_i32_1 = arith.constant 0 : i32
    return %c0_i32, %c0_i32_0 : i32, i32
  }
  func.func @transform_7(%arg0: i32) -> (i32, i32, i32) {
    %c0_i32 = arith.constant 0 : i32
    %c0_i32_0 = arith.constant 0 : i32
    %c0_i32_1 = arith.constant 0 : i32
    return %arg0, %c0_i32, %c0_i32_0 : i32, i32, i32
  }
}

</mosaic_0001>

<bundles_post_ra>
// kernel: value_net_forward.1
= control target key start
LH: loop header
LB: loop body
LE: loop exit
PB: predicated region body
PF: predicated region fallthrough
CT: control target
= control target key end

     0   :  { %vm42_vm0 = vcmask 1041408   ;;  %v286_v1 = vmov 0.0   ;;  %vm287_vm1 = vmmov 0   ;;  %vm38_vm2 = vcmask 31744   ;;  %s365_s0 = inlined_call_operand.vmem [shape: bf16[8,4], index: 0, kind: input, shape index: {}]   ;;  %s366_s1 = inlined_call_operand.vmem [shape: bf16[4,32], index: 1, kind: input, shape index: {}]   ;;  %s367_s2 = inlined_call_operand.vmem [shape: f32[1,32], index: 2, kind: input, shape index: {}]   ;;  %s368_s3 = inlined_call_operand.vmem [shape: bf16[32,32], index: 3, kind: input, shape index: {}]   ;;  %s369_s4 = inlined_call_operand.vmem [shape: f32[1,32], index: 4, kind: input, shape index: {}]   ;;  %s370_s5 = inlined_call_operand.vmem [shape: bf16[1,32], index: 5, kind: input, shape index: {}]   ;;  %s371_s6 = inlined_call_operand.<no memory space> [shape: f32[1,1], index: 6, kind: input, shape index: {}]   ;;  %s372_s7 = inlined_call_operand.hbm [shape: f32[1,1,8], index: 7, kind: output, shape index: {}]  }
   0x1   :  { %v30_v0 = vld [vmem:[%s366_s1] sm:$0x3]  ;;  %237 = vmatprep.subr.bf16.mxu0 %v286_v1  ;;  %239 = vmatprep.mubr.msk.bf16.mxu0 %vm287_vm1, %v286_v1 }
   0x2   :  { %v44_v2 = vsel %vm42_vm0, %v30_v0, 0  ;;  %v29_v3 = vld [vmem:[%s365_s0] sm:$0xf]  ;;  %243 = vmatprep.subr.bf16.mxu1 %v286_v1  ;;  %247 = vmatprep.mubr.msk.bf16.mxu1 %vm287_vm1, %v286_v1 }
   0x3   :  { %238 = vmatpush3.bf16.msra.mxu0 %v44_v2 }
   0x4   :  { %251 = vmatprep.subr.bf16.mxu0 %v286_v1 }
   0x5   :  { %13 = vsyncpa [#allocation4], 0  ;;  %v260_v4 = vld [vmem:[%s368_s3] sm:$0xff]   ;;  %v261_v5 = vld [vmem:[%s368_s3 + $0x8] sm:$0xff]   ;;  %vm111_vm3 = vcmask 261120   ;;  %v159_v24 = vstv %s371_s6  ;;  %vm207_vm4 = vcmask 57344  }
   0x6   :  { %240 = vmatmul.mubr.msk.bf16.vlgmr.msra.gmra.mrb[0].mxu0 %vm38_vm2, %v29_v3  ;;  %244 = vmatpush3.bf16.msra.mxu1 %v260_v4  ;;  %v223_v6 = vld [vmem:[%s367_s2] ss:$0 sm:$0xff] }
   0x7   :  { %253 = vmatprep.mubr.msk.bf16.mxu0 %vm287_vm1, %v286_v1  ;;  %245 = vmatprep.subr.bf16.mxu1 %v286_v1  ;;  %v225_v14 = vld [vmem:[%s369_s4] ss:$0 sm:$0xff]  ;;  %s288_s4 = smov [#allocation3]  }
   0x8   :  { %v156_v23 = vld [vmem:[%s370_s5] sm:$0x1]  ;;  %s215_s13 = sshll.u32 %s288_s4, 4  ;;  %s216_s13 = int_to_ptr.vmem [resolvable:$true] %s215_s13 }
   0x9   :  { %s262_s14 = scalar_lea.vmem %s216_s13, 16  ;;  %s266_s15 = scalar_lea.vmem %s216_s13, 32 }
   0xa   :  { %246 = vmatpush3.bf16.msra.mxu1 %v261_v5  ;;  %p263_p0 = scmp.ne.s32.totalorder %s216_s13, %s262_s14  ;;  %p267_p1 = scmp.lt.s32.totalorder %s216_s13, %s216_s13 }
   0xb   :  { %p268_p2 = scmp.lt.s32.totalorder %s266_s15, %s262_s14 }
   0xd   :  { %p269_p3 = por %p268_p2, %p267_p1 }
   0xf   :  { %p270_p4 = pnand %p269_p3, %p263_p0 }
  0xd9   :  { %v80_v7 = vpop.f32.mrb[0].mxu0 }
  0xda   :  { %v81_v8 = vadd.f32 %v223_v6, %v80_v7  ;;  %v241_v9 = vpop.f32.mrb[1].mxu0 }
  0xdb   :  { %v83_v10 = vpop.f32.mrb[2].mxu0 }
  0xdc   :  { %v86_v11 = vmax.f32 %v81_v8, 0.0  ;;  %v242_v12 = vpop.f32.mrb[3].mxu0 }
  0xde   :  { %v87_v13 = vpack.c.bf16 %v86_v11, %v86_v11 }
  0xe0   :  { %248 = vmatmul.mubr.msk.bf16.vlgmr.msra.gmra.mrb[0].mxu1 %vm111_vm3, %v87_v13 }
 0x1b3   :  { %v149_v15 = vpop.f32.mrb[0].mxu1 }
 0x1b4   :  { %v150_v16 = vadd.f32 %v225_v14, %v149_v15  ;;  %v249_v17 = vpop.f32.mrb[1].mxu1 }
 0x1b5   :  { %v152_v18 = vpop.f32.mrb[2].mxu1 }
 0x1b6   :  { %v155_v19 = vmax.f32 %v150_v16, 0.0  ;;  %v250_v20 = vpop.f32.mrb[3].mxu1 }
 0x1b8   :  { %v157_v21 = vpack.c.bf16 %v155_v19, %v155_v19 }
 0x1ba   :  { %v164_v22 = vsel %vm111_vm3, %v157_v21, 0 }
 0x1bb   :  { %252 = vmatpush3.bf16.xpose.msra.mxu0 %v164_v22 }
 0x1c2   :  { %254 = vmatmul.mubr.msk.bf16.vlgmr.msra.gmra.mrb[4].mxu0 %vm111_vm3, %v156_v23 }
 0x295   :  { %v200_v25 = vpop.f32.mrb[4].mxu0 }
 0x296   :  { %v201_v26 = vadd.f32 %v200_v25, %v159_v24  ;;  %v255_v27 = vpop.f32.mrb[5].mxu0 }
 0x297   :  { %v203_v28 = vpop.f32.mrb[6].mxu0 }
 0x298   :  { %v206_v29 = vmax.f32 %v201_v26, 0.0  ;;  %v256_v30 = vpop.f32.mrb[7].mxu0 }
 0x29a   :  { %208 = vst.msk [vmem:[#allocation3] sm:$0x1] %vm207_vm4, %v206_v29 }
 0x29b   :  { %273 = shalt.err (!%p270_p4)
}
 0x29c   :  { %s274_s16 = scalar_lea.hbm %s372_s7, 16 }
 0x29d   :  { %p275_p5 = scmp.ne.s32.totalorder %s372_s7, %s274_s16  ;;  %p278_p6 = scmp.lt.u32.totalorder %s274_s16, %s372_s7 }
 0x29f   :  { %p280_p7 = pnand %p278_p6, %p275_p5 }
 0x2a1   :  { %283 = shalt.err (!%p280_p7)
}
 0x2a2   :  { %218 = dma.vmem_to_hbm [thread:$0]  %s216_s13, 16, %s372_s7, [#allocation4]  }
 0x2a3   :  { %284 = dma.done.wait [#allocation4], 16  }
 0x2a4   :  { %285 = vsyncadd [#allocation4], 4294967280 }
 0x2a5   :  { %222 = vsyncpa [#allocation4], 1 }

</bundles_post_ra>
